<compile_context>
chip_gen: v7x
topology: tpu7x:2x2x1
jax: 0.10.0
libtpu: 0.0.40
codegen_flags: <defaults>
</compile_context>

<pallas_src>
import functools

import jax
import jax.numpy as jnp
from jax.experimental import pallas as pl
from jax.experimental.pallas import tpu as pltpu


def _round_up(x, m):
    return (x + m - 1) // m * m


def fuse_swiglu_weights(w_act, w_fc):
    """One-time weight preparation (parameter-load time, NOT per call).

    Args:
      w_act, w_fc: [out_features, in_features] bf16 (torch nn.Linear layout).
    Returns:
      (w_fused, (n_out, tk, tn)) where w_fused is [Kp, 2*Np]: transposed to
      [K, N], zero-padded to tile multiples, and column-interleaved per output
      tile so block j (width 2*tn) holds [act_tile_j | fc_tile_j].
    """
    N, K = w_act.shape
    assert w_fc.shape == (N, K)
    tk = min(512, _round_up(K, 128))
    tn = min(512, _round_up(N, 128))
    Kp, Np = _round_up(K, tk), _round_up(N, tn)

    def prep(w):
        wt = w.T  # [K, N]
        return jnp.pad(wt, ((0, Kp - K), (0, Np - N)))

    wa, wf = prep(w_act), prep(w_fc)
    nb = Np // tn
    fused = jnp.concatenate(
        [wa.reshape(Kp, nb, tn), wf.reshape(Kp, nb, tn)], axis=-1
    ).reshape(Kp, 2 * Np)
    return fused, (N, tk, tn)


def _swiglu_kernel(x_ref, w_ref, o_ref, acc_ref, *, tn):
    k = pl.program_id(2)

    @pl.when(k == 0)
    def _():
        acc_ref[...] = jnp.zeros_like(acc_ref)

    # Single MXU matmul per step: (tm, tk) @ (tk, 2*tn) -> (tm, 2*tn) f32.
    # Left half of the accumulator is the activation branch, right half the
    # gate (fc) branch.
    acc_ref[...] += jnp.dot(
        x_ref[...], w_ref[...], preferred_element_type=jnp.float32
    )

    @pl.when(k == pl.num_programs(2) - 1)
    def _():
        acc = acc_ref[...]
        a = acc[:, :tn]      # tn is a multiple of 128 -> lane-tile aligned slice
        f = acc[:, tn:]
        o_ref[...] = (a * jax.nn.sigmoid(a) * f).astype(o_ref.dtype)


@functools.partial(jax.jit, static_argnames=("n_out", "tk", "tn"))
def swiglu(x, w_fused, *, n_out, tk, tn):
    """x: [M, K] bf16. w_fused: [Kp, 2*Np] from fuse_swiglu_weights.

    Returns [M, n_out] in x.dtype.
    """
    M, K = x.shape
    Kp, two_np = w_fused.shape
    Np = two_np // 2

    tm = min(256, _round_up(M, 8))
    Mp = _round_up(M, tm)
    if Mp != M or Kp != K:
        x = jnp.pad(x, ((0, Mp - M), (0, Kp - K)))

    grid = (Mp // tm, Np // tn, Kp // tk)

    out = pl.pallas_call(
        functools.partial(_swiglu_kernel, tn=tn),
        out_shape=jax.ShapeDtypeStruct((Mp, Np), x.dtype),
        grid_spec=pltpu.PrefetchScalarGridSpec(
            num_scalar_prefetch=0,
            grid=grid,
            in_specs=[
                pl.BlockSpec((tm, tk), lambda i, j, k: (i, k)),      # x tile
                pl.BlockSpec((tk, 2 * tn), lambda i, j, k: (k, j)),  # fused W
            ],
            out_specs=pl.BlockSpec((tm, tn), lambda i, j, k: (i, j)),
            scratch_shapes=[pltpu.VMEM((tm, 2 * tn), jnp.float32)],
        ),
        compiler_params=pltpu.CompilerParams(
            dimension_semantics=("parallel", "parallel", "arbitrary"),
        ),
    )(x, w_fused)
    return out[:M, :n_out]


def swiglu_reference(x, w_act, w_fc):
    """Pure-JAX reference matching the PyTorch forward (torch weight layout)."""
    a = jnp.dot(x, w_act.T, preferred_element_type=jnp.float32)
    f = jnp.dot(x, w_fc.T, preferred_element_type=jnp.float32)
    return (a * jax.nn.sigmoid(a) * f).astype(x.dtype)


def _run_case(key, batch, in_features, out_features, dtype=jnp.bfloat16):
    kx, ka, kf = jax.random.split(key, 3)
    x = jax.random.normal(kx, (batch, in_features), jnp.float32).astype(dtype)

    # nn.Linear weights: [out_features, in_features], torch-like uniform init.
    bound = 1.0 / (in_features ** 0.5)
    w_act = jax.random.uniform(
        ka, (out_features, in_features), jnp.float32, -bound, bound
    ).astype(dtype)
    w_fc = jax.random.uniform(
        kf, (out_features, in_features), jnp.float32, -bound, bound
    ).astype(dtype)

    # One-time weight prep (transpose + pad + interleave), outside the hot path.
    w_fused, (n_out, tk, tn) = fuse_swiglu_weights(w_act, w_fc)
    w_fused = jax.block_until_ready(w_fused)

    out = jax.block_until_ready(swiglu(x, w_fused, n_out=n_out, tk=tk, tn=tn))
    ref = jax.block_until_ready(swiglu_reference(x, w_act, w_fc))

    assert out.shape == (batch, out_features) and out.dtype == dtype
    err = jnp.max(jnp.abs(out.astype(jnp.float32) - ref.astype(jnp.float32)))
    assert float(err) < 1e-1, f"max abs error too large: {err}"


if __name__ == "__main__":
    key = jax.random.PRNGKey(0)
    k1, k2 = jax.random.split(key)

    # Tile-aligned shape (single grid step: no pipeline overhead).
    _run_case(k1, batch=128, in_features=256, out_features=256)
    # Ragged shape: exercises the wrapper-side padding path.
    _run_case(k2, batch=100, in_features=192, out_features=320)

    print("KERNEL_OK")
</pallas_src>

<mosaic_0001>
module attributes {stable_mosaic.version = 11 : i64} {
  func.func @_swiglu_kernel(%arg0: i32, %arg1: i32, %arg2: i32, %arg3: memref<128x256xbf16, #tpu.memory_space<vmem>>, %arg4: memref<256x512xbf16, #tpu.memory_space<vmem>>, %arg5: memref<128x256xbf16, #tpu.memory_space<vmem>>, %arg6: memref<128x512xf32, #tpu.memory_space<vmem>>) attributes {dimension_semantics = [#tpu.dimension_semantics<parallel>, #tpu.dimension_semantics<parallel>, #tpu.dimension_semantics<arbitrary>], iteration_bounds = array<i64: 1, 1, 1>, scalar_prefetch = 0 : i64, scratch_operands = 1 : i64, tpu.core_type = #tpu.core_type<tc>, window_params = [{transform_indices = @transform_0, window_bounds = array<i64: 128, 256>}, {transform_indices = @transform_1, window_bounds = array<i64: 256, 512>}, {transform_indices = @transform_2, window_bounds = array<i64: 128, 256>}]} {
    %c0_i32 = arith.constant 0 : i32
    %0 = arith.cmpi eq, %arg2, %c0_i32 : i32
    %1 = arith.extui %0 : i1 to i32
    %c0_i32_0 = arith.constant 0 : i32
    %2 = arith.cmpi ne, %1, %c0_i32_0 : i32
    scf.if %2 {
      %cst_10 = arith.constant 0.000000e+00 : f32
      %12 = vector.broadcast %cst_10 : f32 to vector<128x512xf32>
      %c0_11 = arith.constant 0 : index
      %c0_12 = arith.constant 0 : index
      %13 = vector.load %arg6[%c0_11, %c0_12] : memref<128x512xf32, #tpu.memory_space<vmem>>, vector<128x512xf32>
      tpu.vector_store %arg6[%c0_11, %c0_12], %12 {strides = array<i32>} : memref<128x512xf32, #tpu.memory_space<vmem>>, vector<128x512xf32>,
    } else {
    }
    %c0 = arith.constant 0 : index
    %c0_1 = arith.constant 0 : index
    %3 = vector.load %arg6[%c0, %c0_1] : memref<128x512xf32, #tpu.memory_space<vmem>>, vector<128x512xf32>
    %c0_2 = arith.constant 0 : index
    %c0_3 = arith.constant 0 : index
    %4 = vector.load %arg3[%c0_2, %c0_3] : memref<128x256xbf16, #tpu.memory_space<vmem>>, vector<128x256xbf16>
    %c0_4 = arith.constant 0 : index
    %c0_5 = arith.constant 0 : index
    %5 = vector.load %arg4[%c0_4, %c0_5] : memref<256x512xbf16, #tpu.memory_space<vmem>>, vector<256x512xbf16>
    %cst = arith.constant dense<0.000000e+00> : vector<128x512xf32>
    %6 = tpu.matmul %4, %5, %cst {dimension_numbers = #tpu.dot_dimension_numbers<[1], [0], [0], [1], [0, 0, 1, 1], [], []>} : vector<128x256xbf16>, vector<256x512xbf16>, vector<128x512xf32> -> vector<128x512xf32>
    %7 = arith.addf %3, %6 : vector<128x512xf32>
    %c0_6 = arith.constant 0 : index
    %c0_7 = arith.constant 0 : index
    %8 = vector.load %arg6[%c0_6, %c0_7] : memref<128x512xf32, #tpu.memory_space<vmem>>, vector<128x512xf32>
    tpu.vector_store %arg6[%c0_6, %c0_7], %7 {strides = array<i32>} : memref<128x512xf32, #tpu.memory_space<vmem>>, vector<128x512xf32>,
    %c0_i32_8 = arith.constant 0 : i32
    %9 = arith.cmpi eq, %arg2, %c0_i32_8 : i32
    %10 = arith.extui %9 : i1 to i32
    %c0_i32_9 = arith.constant 0 : i32
    %11 = arith.cmpi ne, %10, %c0_i32_9 : i32
    scf.if %11 {
      %c0_10 = arith.constant 0 : index
      %c0_11 = arith.constant 0 : index
      %12 = vector.load %arg6[%c0_10, %c0_11] : memref<128x512xf32, #tpu.memory_space<vmem>>, vector<128x512xf32>
      %13 = vector.extract_strided_slice %12 {offsets = [0, 0], sizes = [128, 256], strides = [1, 1]} : vector<128x512xf32> to vector<128x256xf32>
      %14 = vector.extract_strided_slice %12 {offsets = [0, 256], sizes = [128, 256], strides = [1, 1]} : vector<128x512xf32> to vector<128x256xf32>
      %15 = arith.negf %13 : vector<128x256xf32>
      %16 = math.exp %15 : vector<128x256xf32>
      %cst_12 = arith.constant 1.000000e+00 : f32
      %17 = vector.broadcast %cst_12 : f32 to vector<128x256xf32>
      %18 = arith.addf %17, %16 : vector<128x256xf32>
      %19 = arith.divf %17, %18 : vector<128x256xf32>
      %20 = arith.mulf %13, %19 : vector<128x256xf32>
      %21 = arith.mulf %20, %14 : vector<128x256xf32>
      %22 = arith.truncf %21 : vector<128x256xf32> to vector<128x256xbf16>
      %c0_13 = arith.constant 0 : index
      %c0_14 = arith.constant 0 : index
      %23 = vector.load %arg5[%c0_13, %c0_14] : memref<128x256xbf16, #tpu.memory_space<vmem>>, vector<128x256xbf16>
      tpu.vector_store %arg5[%c0_13, %c0_14], %22 {strides = array<i32>} : memref<128x256xbf16, #tpu.memory_space<vmem>>, vector<128x256xbf16>,
    } else {
    }
    return
  }
  func.func @transform_0(%arg0: i32, %arg1: i32, %arg2: i32) -> (i32, i32) {
    %c0_i32 = arith.constant 0 : i32
    return %arg0, %arg2 : i32, i32
  }
  func.func @transform_1(%arg0: i32, %arg1: i32, %arg2: i32) -> (i32, i32) {
    %c0_i32 = arith.constant 0 : i32
    return %arg2, %arg1 : i32, i32
  }
  func.func @transform_2(%arg0: i32, %arg1: i32, %arg2: i32) -> (i32, i32) {
    %c0_i32 = arith.constant 0 : i32
    return %arg0, %arg1 : i32, i32
  }
}

</mosaic_0001>

<bundles_post_ra>
// kernel: swiglu.1
= control target key start
LH: loop header
LB: loop body
LE: loop exit
PB: predicated region body
PF: predicated region fallthrough
CT: control target
= control target key end

     0   :  { %7 = vsyncpa [#allocation4], 0  ;;  %s2212_s0 = inlined_call_operand.hbm [shape: bf16[128,256], index: 0, kind: input, shape index: {}]   ;;  %s2213_s1 = inlined_call_operand.hbm [shape: bf16[256,512], index: 1, kind: input, shape index: {}]   ;;  %s2214_s2 = inlined_call_operand.hbm [shape: bf16[128,256], index: 2, kind: output, shape index: {}]  }
   0x1   :  { %8 = vsyncpa [#allocation7], 0 }
   0x2   :  { %9 = vsyncpa [#allocation5], 0  ;;  %s1930_s9 = smov [#allocation3]   ;;  %s1858_s13 = scalar_lea.hbm %s2212_s0, 2048 }
   0x3   :  { %s15_s10 = sshll.u32 %s1930_s9, 4  ;;  %p1859_p0 = scmp.ne.s32.totalorder %s2212_s0, %s1858_s13  ;;  %s16_s10 = int_to_ptr.vmem [resolvable:$true] %s15_s10 }
   0x4   :  { %p1862_p1 = scmp.lt.u32.totalorder %s1858_s13, %s2212_s0 }
   0x6   :  { %p1864_p2 = pnand %p1862_p1, %p1859_p0 }
   0x8   :  { %1867 = shalt.err (!%p1864_p2)
}
   0x9   :  { %s1868_s18 = scalar_lea.vmem %s16_s10, 2048  ;;  %p1873_p4 = scmp.lt.s32.totalorder %s16_s10, %s16_s10 }
   0xa   :  { %p1869_p3 = scmp.ne.s32.totalorder %s16_s10, %s1868_s18  ;;  %p1874_p5 = scmp.lt.s32.totalorder %s1868_s18, %s1868_s18 }
   0xc   :  { %p1875_p6 = por %p1874_p5, %p1873_p4 }
   0xe   :  { %p1876_p7 = pnand %p1875_p6, %p1869_p3 }
  0x10   :  { %1879 = shalt.err (!%p1876_p7)
}
  0x11   :  { %s1931_s19 = smov 128   ;;  %s1932_s20 = smov 8  }
  0x12   :  { %21 = dma.hbm_to_vmem [thread:$0]  %s2212_s0, 2048, %s16_s10, [#allocation4], %s1931_s19, %s1931_s19, %s1932_s20  }
  0x13   :  { %s1933_s23 = smov [#allocation6]   ;;  %s1880_s27 = scalar_lea.hbm %s2213_s1, 8192 }
  0x14   :  { %s27_s24 = sshll.u32 %s1933_s23, 4  ;;  %p1881_p8 = scmp.ne.s32.totalorder %s2213_s1, %s1880_s27  ;;  %s28_s24 = int_to_ptr.vmem [resolvable:$true] %s27_s24 }
  0x15   :  { %p1884_p9 = scmp.lt.u32.totalorder %s1880_s27, %s2213_s1 }
  0x17   :  { %p1886_p10 = pnand %p1884_p9, %p1881_p8 }
  0x19   :  { %1889 = shalt.err (!%p1886_p10)
}
  0x1a   :  { %s1890_s4 = scalar_lea.vmem %s28_s24, 8192  ;;  %p1895_p12 = scmp.lt.s32.totalorder %s28_s24, %s28_s24 }
  0x1b   :  { %p1891_p11 = scmp.ne.s32.totalorder %s28_s24, %s1890_s4  ;;  %p1896_p13 = scmp.lt.s32.totalorder %s1890_s4, %s1890_s4 }
  0x1d   :  { %p1897_p0 = por %p1896_p13, %p1895_p12 }
  0x1f   :  { %p1898_p1 = pnand %p1897_p0, %p1891_p11 }
  0x21   :  { %1901 = shalt.err (!%p1898_p1)
}
  0x22   :  { %s1934_s0 = smov 256   ;;  %s1935_s5 = smov 16  }
  0x23   :  { %33 = dma.hbm_to_vmem [thread:$0]  %s2213_s1, 8192, %s28_s24, [#allocation7], %s1934_s0, %s1934_s0, %s1935_s5  }
  0x24   :  { %1924 = dma.done.wait [#allocation4], 2048  }
  0x25   :  { %1925 = vsyncadd [#allocation4], 4294965248 }
  0x26   :  { %1926 = dma.done.wait [#allocation7], 8192  }
  0x27   :  { %1927 = vsyncadd [#allocation7], 4294959104  ;;  %v1610_v0 = vld [vmem:[#allocation6 + $0x4] ss:$16 sps:$4 sm:$0xff]   ;;  %v1612_v1 = vld [vmem:[#allocation6] ss:$16 sps:$4 sm:$0xff]  }
  0x28   :  { %652 = vmatprep.subr.bf16.mxu0 %v1610_v0  ;;  %v1613_v2 = vld [vmem:[#allocation6 + $0x24] ss:$16 sps:$4 sm:$0xff]   ;;  %v1615_v3 = vld [vmem:[#allocation6 + $0x20] ss:$16 sps:$4 sm:$0xff]   ;;  %v1631_v7 = vld [vmem:[#allocation6 + $0xc] ss:$16 sps:$4 sm:$0xff]  }
  0x29   :  { %653 = vmatpush1.bf16.msra.mxu0 %v1612_v1  ;;  %v1616_v4 = vld [vmem:[#allocation6 + $0x44] ss:$16 sps:$4 sm:$0xff]   ;;  %v1618_v5 = vld [vmem:[#allocation6 + $0x40] ss:$16 sps:$4 sm:$0xff]   ;;  %v1633_v8 = vld [vmem:[#allocation6 + $0x8] ss:$16 sps:$4 sm:$0xff]   ;;  %765 = vmatprep.subr.bf16.mxu1 %v1631_v7 }
  0x2a   :  { %654 = vmatprep.subr.bf16.mxu0 %v1613_v2  ;;  %v1619_v6 = vld [vmem:[#allocation6 + $0x64] ss:$16 sps:$4 sm:$0xff]   ;;  %v1621_v9 = vld [vmem:[#allocation6 + $0x60] ss:$16 sps:$4 sm:$0xff]   ;;  %v1637_v11 = vld [vmem:[#allocation6 + $0x2c] ss:$16 sps:$4 sm:$0xff]   ;;  %766 = vmatpush1.bf16.msra.mxu1 %v1633_v8 }
  0x2b   :  { %v1622_v10 = vld [vmem:[#allocation6 + $0x84] ss:$16 sps:$4 sm:$0xff]   ;;  %v1639_v12 = vld [vmem:[#allocation6 + $0x28] ss:$16 sps:$4 sm:$0xff]   ;;  %767 = vmatprep.subr.bf16.mxu1 %v1637_v11  ;;  %v1624_v13 = vld [vmem:[#allocation6 + $0x80] ss:$16 sps:$4 sm:$0xff]  }
  0x2c   :  { %v1643_v14 = vld [vmem:[#allocation6 + $0x4c] ss:$16 sps:$4 sm:$0xff]   ;;  %v1625_v15 = vld [vmem:[#allocation6 + $0xa4] ss:$16 sps:$4 sm:$0xff]   ;;  %v1645_v16 = vld [vmem:[#allocation6 + $0x48] ss:$16 sps:$4 sm:$0xff]  }
  0x2d   :  { %655 = vmatpush1.bf16.msra.mxu0 %v1615_v3  ;;  %v1649_v17 = vld [vmem:[#allocation6 + $0x6c] ss:$16 sps:$4 sm:$0xff]   ;;  %v1627_v18 = vld [vmem:[#allocation6 + $0xa0] ss:$16 sps:$4 sm:$0xff]   ;;  %v1628_v19 = vld [vmem:[#allocation6 + $0xc4] ss:$16 sps:$4 sm:$0xff]  }
  0x2e   :  { %656 = vmatprep.subr.bf16.mxu0 %v1616_v4  ;;  %768 = vmatpush1.bf16.msra.mxu1 %v1639_v12  ;;  %v1651_v20 = vld [vmem:[#allocation6 + $0x68] ss:$16 sps:$4 sm:$0xff]   ;;  %v1655_v21 = vld [vmem:[#allocation6 + $0x8c] ss:$16 sps:$4 sm:$0xff]   ;;  %v1630_v22 = vld [vmem:[#allocation6 + $0xc0] ss:$16 sps:$4 sm:$0xff]  }
  0x2f   :  { %769 = vmatprep.subr.bf16.mxu1 %v1643_v14  ;;  %v1634_v23 = vld [vmem:[#allocation6 + $0xe4] ss:$16 sps:$4 sm:$0xff]   ;;  %v1657_v24 = vld [vmem:[#allocation6 + $0x88] ss:$16 sps:$4 sm:$0xff]   ;;  %v1661_v25 = vld [vmem:[#allocation6 + $0xac] ss:$16 sps:$4 sm:$0xff]  }
  0x30   :  { %v1636_v26 = vld [vmem:[#allocation6 + $0xe0] ss:$16 sps:$4 sm:$0xff]   ;;  %v1640_v27 = vld [vmem:[#allocation6 + $0x104] ss:$16 sps:$4 sm:$0xff]   ;;  %v1663_v28 = vld [vmem:[#allocation6 + $0xa8] ss:$16 sps:$4 sm:$0xff]  }
  0x31   :  { %657 = vmatpush1.bf16.msra.mxu0 %v1618_v5  ;;  %v1667_v29 = vld [vmem:[#allocation6 + $0xcc] ss:$16 sps:$4 sm:$0xff]   ;;  %v1642_v30 = vld [vmem:[#allocation6 + $0x100] ss:$16 sps:$4 sm:$0xff]   ;;  %v1646_v31 = vld [vmem:[#allocation6 + $0x124] ss:$16 sps:$4 sm:$0xff]  }
  0x32   :  { %658 = vmatprep.subr.bf16.mxu0 %v1619_v6  ;;  %770 = vmatpush1.bf16.msra.mxu1 %v1645_v16  ;;  %v1669_v32 = vld [vmem:[#allocation6 + $0xc8] ss:$16 sps:$4 sm:$0xff]   ;;  %v1673_v33 = vld [vmem:[#allocation6 + $0xec] ss:$16 sps:$4 sm:$0xff]   ;;  %v1648_v34 = vld [vmem:[#allocation6 + $0x120] ss:$16 sps:$4 sm:$0xff]  }
  0x33   :  { %771 = vmatprep.subr.bf16.mxu1 %v1649_v17  ;;  %v1690_v35 = vld [vmem:[#allocation3 + $0x4] ss:$8 sps:$4 sm:$0xff]   ;;  %v1675_v37 = vld [vmem:[#allocation6 + $0xe8] ss:$16 sps:$4 sm:$0xff]   ;;  %v1654_v39 = vld [vmem:[#allocation6 + $0x140] ss:$16 sps:$4 sm:$0xff]  }
  0x34   :  { %v1652_v36 = vld [vmem:[#allocation6 + $0x144] ss:$16 sps:$4 sm:$0xff]   ;;  %684 = vmatprep.mubr.bf16.mxu0 %v1690_v35  ;;  %v1679_v38 = vld [vmem:[#allocation6 + $0x10c] ss:$16 sps:$4 sm:$0xff]   ;;  %797 = vmatprep.mubr.bf16.mxu1 %v1690_v35  ;;  %v1681_v41 = vld [vmem:[#allocation6 + $0x108] ss:$16 sps:$4 sm:$0xff]  }
  0x35   :  { %659 = vmatpush1.bf16.msra.mxu0 %v1621_v9  ;;  %v1658_v40 = vld [vmem:[#allocation6 + $0x164] ss:$16 sps:$4 sm:$0xff]   ;;  %v1685_v42 = vld [vmem:[#allocation6 + $0x12c] ss:$16 sps:$4 sm:$0xff]   ;;  %v1660_v43 = vld [vmem:[#allocation6 + $0x160] ss:$16 sps:$4 sm:$0xff]  }
  0x36   :  { %660 = vmatprep.subr.bf16.mxu0 %v1622_v10  ;;  %772 = vmatpush1.bf16.msra.mxu1 %v1651_v20  ;;  %v1664_v44 = vld [vmem:[#allocation6 + $0x184] ss:$16 sps:$4 sm:$0xff]   ;;  %v1687_v45 = vld [vmem:[#allocation6 + $0x128] ss:$16 sps:$4 sm:$0xff]   ;;  %v1691_v46 = vld [vmem:[#allocation6 + $0x14c] ss:$16 sps:$4 sm:$0xff]  }
  0x37   :  { %773 = vmatprep.subr.bf16.mxu1 %v1655_v21  ;;  %v1666_v47 = vld [vmem:[#allocation6 + $0x180] ss:$16 sps:$4 sm:$0xff]   ;;  %v1670_v48 = vld [vmem:[#allocation6 + $0x1a4] ss:$16 sps:$4 sm:$0xff]   ;;  %v1693_v49 = vld [vmem:[#allocation6 + $0x148] ss:$16 sps:$4 sm:$0xff]  }
  0x38   :  { %v1694_v50 = vld [vmem:[#allocation6 + $0x16c] ss:$16 sps:$4 sm:$0xff]   ;;  %v1672_v51 = vld [vmem:[#allocation6 + $0x1a0] ss:$16 sps:$4 sm:$0xff]   ;;  %v1676_v52 = vld [vmem:[#allocation6 + $0x1c4] ss:$16 sps:$4 sm:$0xff]  }
  0x39   :  { %661 = vmatpush1.bf16.msra.mxu0 %v1624_v13  ;;  %v1696_v53 = vld [vmem:[#allocation6 + $0x168] ss:$16 sps:$4 sm:$0xff]   ;;  %v1700_v54 = vld [vmem:[#allocation6 + $0x18c] ss:$16 sps:$4 sm:$0xff]   ;;  %v1678_v55 = vld [vmem:[#allocation6 + $0x1c0] ss:$16 sps:$4 sm:$0xff]  }
  0x3a   :  { %662 = vmatprep.subr.bf16.mxu0 %v1625_v15  ;;  %774 = vmatpush1.bf16.msra.mxu1 %v1657_v24  ;;  %v1682_v56 = vld [vmem:[#allocation6 + $0x1e4] ss:$16 sps:$4 sm:$0xff]   ;;  %v1702_v57 = vld [vmem:[#allocation6 + $0x188] ss:$16 sps:$4 sm:$0xff]   ;;  %v1703_v58 = vld [vmem:[#allocation6 + $0x1ac] ss:$16 sps:$4 sm:$0xff]  }
  0x3b   :  { %775 = vmatprep.subr.bf16.mxu1 %v1661_v25  ;;  %v1684_v59 = vld [vmem:[#allocation6 + $0x1e0] ss:$16 sps:$4 sm:$0xff]   ;;  %v1705_v60 = vld [vmem:[#allocation6 + $0x1a8] ss:$16 sps:$4 sm:$0xff]   ;;  %v1709_v62 = vld [vmem:[#allocation6 + $0x1cc] ss:$16 sps:$4 sm:$0xff]  }
  0x3c   :  { %v1688_v61 = vld [vmem:[#allocation3] ss:$8 sps:$4 sm:$0xff]   ;;  %v1697_v63 = vld [vmem:[#allocation3 + $0x14] ss:$8 sps:$4 sm:$0xff]   ;;  %v1699_v3 = vld [vmem:[#allocation3 + $0x10] ss:$8 sps:$4 sm:$0xff]  }
  0x3d   :  { %663 = vmatpush1.bf16.msra.mxu0 %v1627_v18  ;;  %v1711_v0 = vld [vmem:[#allocation6 + $0x1c8] ss:$16 sps:$4 sm:$0xff]   ;;  %v1712_v1 = vld [vmem:[#allocation6 + $0x1ec] ss:$16 sps:$4 sm:$0xff]   ;;  %s1936_s1 = smov [#allocation8]  }
  0x3e   :  { %664 = vmatprep.subr.bf16.mxu0 %v1628_v19  ;;  %776 = vmatpush1.bf16.msra.mxu1 %v1663_v28  ;;  %v1714_v2 = vld [vmem:[#allocation6 + $0x1e8] ss:$16 sps:$4 sm:$0xff]   ;;  %v1706_v4 = vld [vmem:[#allocation3 + $0x24] ss:$8 sps:$4 sm:$0xff]   ;;  %v1715_v6 = vld [vmem:[#allocation3 + $0x34] ss:$8 sps:$4 sm:$0xff]  }
  0x3f   :  { %777 = vmatprep.subr.bf16.mxu1 %v1667_v29  ;;  %v1708_v5 = vld [vmem:[#allocation3 + $0x20] ss:$8 sps:$4 sm:$0xff]   ;;  %v1717_v7 = vld [vmem:[#allocation3 + $0x30] ss:$8 sps:$4 sm:$0xff]   ;;  %v1718_v8 = vld [vmem:[#allocation3 + $0x44] ss:$8 sps:$4 sm:$0xff]  }
  0x40   :  { %v1720_v9 = vld [vmem:[#allocation3 + $0x40] ss:$8 sps:$4 sm:$0xff]   ;;  %v1721_v10 = vld [vmem:[#allocation3 + $0x54] ss:$8 sps:$4 sm:$0xff]   ;;  %v1723_v11 = vld [vmem:[#allocation3 + $0x50] ss:$8 sps:$4 sm:$0xff]  }
  0x41   :  { %665 = vmatpush1.bf16.msra.mxu0 %v1630_v22  ;;  %v1724_v12 = vld [vmem:[#allocation3 + $0x64] ss:$8 sps:$4 sm:$0xff]   ;;  %v1726_v13 = vld [vmem:[#allocation3 + $0x60] ss:$8 sps:$4 sm:$0xff]   ;;  %v1727_v14 = vld [vmem:[#allocation3 + $0x74] ss:$8 sps:$4 sm:$0xff]  }
  0x42   :  { %666 = vmatprep.subr.bf16.mxu0 %v1634_v23  ;;  %778 = vmatpush1.bf16.msra.mxu1 %v1669_v32  ;;  %v1729_v15 = vld [vmem:[#allocation3 + $0x70] ss:$8 sps:$4 sm:$0xff]   ;;  %s1446_s8 = sshll.u32 %s1936_s1, 4  ;;  %s1447_s8 = int_to_ptr.vmem [resolvable:$true] %s1446_s8 }
  0x43   :  { %779 = vmatprep.subr.bf16.mxu1 %v1673_v33  ;;  %s1902_s9 = scalar_lea.vmem %s1447_s8, 2048  ;;  %p1907_p3 = scmp.lt.s32.totalorder %s1447_s8, %s1447_s8 }
  0x44   :  { %p1903_p2 = scmp.ne.s32.totalorder %s1447_s8, %s1902_s9  ;;  %p1908_p4 = scmp.lt.s32.totalorder %s1902_s9, %s1902_s9 }
  0x45   :  { %667 = vmatpush1.bf16.msra.mxu0 %v1636_v26 }
  0x46   :  { %668 = vmatprep.subr.bf16.mxu0 %v1640_v27  ;;  %780 = vmatpush1.bf16.msra.mxu1 %v1675_v37  ;;  %p1909_p5 = por %p1908_p4, %p1907_p3 }
  0x47   :  { %781 = vmatprep.subr.bf16.mxu1 %v1679_v38 }
  0x48   :  { %p1910_p6 = pnand %p1909_p5, %p1903_p2 }
  0x49   :  { %669 = vmatpush1.bf16.msra.mxu0 %v1642_v30 }
  0x4a   :  { %670 = vmatprep.subr.bf16.mxu0 %v1646_v31  ;;  %782 = vmatpush1.bf16.msra.mxu1 %v1681_v41 }
  0x4b   :  { %783 = vmatprep.subr.bf16.mxu1 %v1685_v42 }
  0x4d   :  { %671 = vmatpush1.bf16.msra.mxu0 %v1648_v34 }
  0x4e   :  { %672 = vmatprep.subr.bf16.mxu0 %v1652_v36  ;;  %784 = vmatpush1.bf16.msra.mxu1 %v1687_v45 }
  0x4f   :  { %785 = vmatprep.subr.bf16.mxu1 %v1691_v46 }
  0x51   :  { %673 = vmatpush1.bf16.msra.mxu0 %v1654_v39 }
  0x52   :  { %674 = vmatprep.subr.bf16.mxu0 %v1658_v40  ;;  %786 = vmatpush1.bf16.msra.mxu1 %v1693_v49 }
  0x53   :  { %787 = vmatprep.subr.bf16.mxu1 %v1694_v50 }
  0x55   :  { %675 = vmatpush1.bf16.msra.mxu0 %v1660_v43 }
  0x56   :  { %676 = vmatprep.subr.bf16.mxu0 %v1664_v44  ;;  %788 = vmatpush1.bf16.msra.mxu1 %v1696_v53 }
  0x57   :  { %789 = vmatprep.subr.bf16.mxu1 %v1700_v54 }
  0x59   :  { %677 = vmatpush1.bf16.msra.mxu0 %v1666_v47 }
  0x5a   :  { %678 = vmatprep.subr.bf16.mxu0 %v1670_v48  ;;  %790 = vmatpush1.bf16.msra.mxu1 %v1702_v57 }
  0x5b   :  { %791 = vmatprep.subr.bf16.mxu1 %v1703_v58 }
  0x5d   :  { %679 = vmatpush1.bf16.msra.mxu0 %v1672_v51 }
  0x5e   :  { %680 = vmatprep.subr.bf16.mxu0 %v1676_v52  ;;  %792 = vmatpush1.bf16.msra.mxu1 %v1705_v60 }
  0x5f   :  { %793 = vmatprep.subr.bf16.mxu1 %v1709_v62 }
  0x61   :  { %681 = vmatpush1.bf16.msra.mxu0 %v1678_v55 }
  0x62   :  { %682 = vmatprep.subr.bf16.mxu0 %v1682_v56  ;;  %794 = vmatpush1.bf16.msra.mxu1 %v1711_v0 }
  0x63   :  { %795 = vmatprep.subr.bf16.mxu1 %v1712_v1 }
  0x65   :  { %683 = vmatpush1.bf16.msra.mxu0 %v1684_v59 }
  0x66   :  { %796 = vmatpush1.bf16.msra.mxu1 %v1714_v2 }
  0x68   :  { %685 = vmatmul.mubr.bf16.vlgmr.msra.gmra.mrb[0].mxu0 %v1688_v61 }
  0x69   :  { %694 = vmatprep.mubr.bf16.mxu0 %v1697_v63  ;;  %798 = vmatmul.mubr.bf16.vlgmr.msra.gmra.mrb[0].mxu1 %v1688_v61 }
  0x6a   :  { %807 = vmatprep.mubr.bf16.mxu1 %v1697_v63 }
  0x70   :  { %695 = vmatmul.mubr.bf16.gmra.mrb[4].mxu0 %v1699_v3 }
  0x71   :  { %704 = vmatprep.mubr.bf16.mxu0 %v1706_v4  ;;  %808 = vmatmul.mubr.bf16.gmra.mrb[4].mxu1 %v1699_v3 }
  0x72   :  { %817 = vmatprep.mubr.bf16.mxu1 %v1706_v4 }
  0x78   :  { %705 = vmatmul.mubr.bf16.gmra.mrb[8].mxu0 %v1708_v5 }
  0x79   :  { %714 = vmatprep.mubr.bf16.mxu0 %v1715_v6  ;;  %818 = vmatmul.mubr.bf16.gmra.mrb[8].mxu1 %v1708_v5 }
  0x7a   :  { %827 = vmatprep.mubr.bf16.mxu1 %v1715_v6 }
  0x80   :  { %715 = vmatmul.mubr.bf16.gmra.mrb[12].mxu0 %v1717_v7 }
  0x81   :  { %724 = vmatprep.mubr.bf16.mxu0 %v1718_v8  ;;  %828 = vmatmul.mubr.bf16.gmra.mrb[12].mxu1 %v1717_v7 }
  0x82   :  { %837 = vmatprep.mubr.bf16.mxu1 %v1718_v8 }
  0x88   :  { %725 = vmatmul.mubr.bf16.gmra.mrb[16].mxu0 %v1720_v9 }
  0x89   :  { %734 = vmatprep.mubr.bf16.mxu0 %v1721_v10  ;;  %838 = vmatmul.mubr.bf16.gmra.mrb[16].mxu1 %v1720_v9 }
  0x8a   :  { %847 = vmatprep.mubr.bf16.mxu1 %v1721_v10 }
  0x90   :  { %735 = vmatmul.mubr.bf16.gmra.mrb[20].mxu0 %v1723_v11 }
  0x91   :  { %744 = vmatprep.mubr.bf16.mxu0 %v1724_v12  ;;  %848 = vmatmul.mubr.bf16.gmra.mrb[20].mxu1 %v1723_v11 }
  0x92   :  { %857 = vmatprep.mubr.bf16.mxu1 %v1724_v12 }
  0x98   :  { %745 = vmatmul.mubr.bf16.gmra.mrb[24].mxu0 %v1726_v13 }
  0x99   :  { %754 = vmatprep.mubr.bf16.mxu0 %v1727_v14  ;;  %858 = vmatmul.mubr.bf16.gmra.mrb[24].mxu1 %v1726_v13 }
  0x9a   :  { %867 = vmatprep.mubr.bf16.mxu1 %v1727_v14 }
  0xa0   :  { %755 = vmatmul.mubr.bf16.gmra.mrb[28].mxu0 %v1729_v15 }
  0xa1   :  { %868 = vmatmul.mubr.bf16.gmra.mrb[28].mxu1 %v1729_v15 }
 0x13b   :  { %v1979_v16 = vpop.f32.mrb[0].mxu0 }
 0x13c   :  { %v1539_v17 = vmul.f32 -1.442695, %v1979_v16  ;;  %v1982_v18 = vpop.f32.mrb[1].mxu0  ;;  %v1999_v29 = vpop.f32.mrb[0].mxu1 }
 0x13d   :  { %v1540_v19 = vmul.f32 -1.442695, %v1982_v18  ;;  %v1985_v20 = vpop.f32.mrb[2].mxu0  ;;  %v2004_v32 = vpop.f32.mrb[1].mxu1 }
 0x13e   :  { %1730 = vpow2.f32 %v1539_v17  ;;  %v1541_v21 = vmul.f32 -1.442695, %v1985_v20  ;;  %v1988_v22 = vpop.f32.mrb[3].mxu0  ;;  %v2007_v34 = vpop.f32.mrb[2].mxu1 }
 0x13f   :  { %1732 = vpow2.f32 %v1540_v19  ;;  %v1542_v23 = vmul.f32 -1.442695, %v1988_v22  ;;  %v2009_v36 = vpop.f32.mrb[3].mxu1 }
 0x140   :  { %1734 = vpow2.f32 %v1541_v21 }
 0x141   :  { %1736 = vpow2.f32 %v1542_v23 }
 0x143   :  { %v1991_v24 = vpop.f32.mrb[4].mxu0 }
 0x144   :  { %v1543_v25 = vmul.f32 -1.442695, %v1991_v24  ;;  %v1994_v26 = vpop.f32.mrb[5].mxu0  ;;  %v2019_v49 = vpop.f32.mrb[4].mxu1 }
 0x145   :  { %v1544_v27 = vmul.f32 -1.442695, %v1994_v26  ;;  %v1997_v28 = vpop.f32.mrb[6].mxu0  ;;  %v2024_v52 = vpop.f32.mrb[5].mxu1 }
 0x146   :  { %1738 = vpow2.f32 %v1543_v25  ;;  %v1545_v30 = vmul.f32 -1.442695, %v1997_v28  ;;  %v2002_v31 = vpop.f32.mrb[7].mxu0  ;;  %v2027_v54 = vpop.f32.mrb[6].mxu1 }
 0x147   :  { %1740 = vpow2.f32 %v1544_v27  ;;  %v1546_v33 = vmul.f32 -1.442695, %v2002_v31  ;;  %v2029_v56 = vpop.f32.mrb[7].mxu1 }
 0x148   :  { %v1731_v35 = vpop.eup %1730  ;;  %1742 = vpow2.f32 %v1545_v30 }
 0x149   :  { %v1733_v37 = vpop.eup %1732  ;;  %v1169_v38 = vadd.f32 1.0, %v1731_v35  ;;  %1744 = vpow2.f32 %v1546_v33 }
 0x14a   :  { %v1735_v39 = vpop.eup %1734  ;;  %v1170_v40 = vadd.f32 1.0, %v1733_v37 }
 0x14b   :  { %v1737_v41 = vpop.eup %1736  ;;  %1746 = vrcp.f32 %v1169_v38  ;;  %v1171_v42 = vadd.f32 1.0, %v1735_v39  ;;  %v2011_v43 = vpop.f32.mrb[8].mxu0 }
 0x14c   :  { %1748 = vrcp.f32 %v1170_v40  ;;  %v1172_v44 = vadd.f32 1.0, %v1737_v41  ;;  %v1547_v45 = vmul.f32 -1.442695, %v2011_v43  ;;  %v2014_v46 = vpop.f32.mrb[9].mxu0  ;;  %v2039_v6 = vpop.f32.mrb[8].mxu1 }
 0x14d   :  { %1750 = vrcp.f32 %v1171_v42  ;;  %v1548_v47 = vmul.f32 -1.442695, %v2014_v46  ;;  %v2017_v48 = vpop.f32.mrb[10].mxu0  ;;  %v2045_v11 = vpop.f32.mrb[9].mxu1 }
 0x14e   :  { %1752 = vrcp.f32 %v1172_v44  ;;  %v1549_v50 = vmul.f32 -1.442695, %v2017_v48  ;;  %v2022_v51 = vpop.f32.mrb[11].mxu0  ;;  %v2049_v15 = vpop.f32.mrb[10].mxu1 }
 0x14f   :  { %1754 = vpow2.f32 %v1547_v45  ;;  %v1550_v53 = vmul.f32 -1.442695, %v2022_v51  ;;  %v2053_v21 = vpop.f32.mrb[11].mxu1 }
 0x150   :  { %v1739_v55 = vpop.eup %1738  ;;  %1756 = vpow2.f32 %v1548_v47 }
 0x151   :  { %v1741_v57 = vpop.eup %1740  ;;  %v1173_v58 = vadd.f32 1.0, %v1739_v55  ;;  %1758 = vpow2.f32 %v1549_v50 }
 0x152   :  { %v1743_v59 = vpop.eup %1742  ;;  %v1174_v60 = vadd.f32 1.0, %v1741_v57  ;;  %1760 = vpow2.f32 %v1550_v53 }
 0x153   :  { %v1745_v61 = vpop.eup %1744  ;;  %1762 = vrcp.f32 %v1173_v58  ;;  %v1175_v62 = vadd.f32 1.0, %v1743_v59  ;;  %v2031_v63 = vpop.f32.mrb[12].mxu0 }
 0x154   :  { %1764 = vrcp.f32 %v1174_v60  ;;  %v1176_v0 = vadd.f32 1.0, %v1745_v61  ;;  %v1551_v1 = vmul.f32 -1.442695, %v2031_v63  ;;  %v2034_v2 = vpop.f32.mrb[13].mxu0  ;;  %v2067_v47 = vpop.f32.mrb[12].mxu1 }
 0x155   :  { %v1747_v3 = vpop.eup %1746  ;;  %1766 = vrcp.f32 %v1175_v62  ;;  %v1552_v4 = vmul.f32 -1.442695, %v2034_v2  ;;  %v2037_v5 = vpop.f32.mrb[14].mxu0 }
 0x156   :  { %v1749_v7 = vpop.eup %1748  ;;  %v1265_v8 = vmul.f32 %v1747_v3, %v1979_v16  ;;  %1768 = vrcp.f32 %v1176_v0  ;;  %v1553_v9 = vmul.f32 -1.442695, %v2037_v5  ;;  %v2043_v10 = vpop.f32.mrb[15].mxu0 }
 0x157   :  { %v1751_v12 = vpop.eup %1750  ;;  %v1266_v13 = vmul.f32 %v1749_v7, %v1982_v18  ;;  %1770 = vpow2.f32 %v1551_v1  ;;  %v1554_v14 = vmul.f32 -1.442695, %v2043_v10  ;;  %v2073_v57 = vpop.f32.mrb[13].mxu1 }
 0x158   :  { %v1753_v17 = vpop.eup %1752  ;;  %v1267_v19 = vmul.f32 %v1751_v12, %v1985_v20  ;;  %1772 = vpow2.f32 %v1552_v4  ;;  %v1297_v16 = vmul.f32 %v1265_v8, %v1999_v29  ;;  %v2077_v61 = vpop.f32.mrb[14].mxu1 }
 0x159   :  { %v1755_v23 = vpop.eup %1754  ;;  %v1268_v25 = vmul.f32 %v1753_v17, %v1988_v22  ;;  %1774 = vpow2.f32 %v1553_v9  ;;  %v1298_v27 = vmul.f32 %v1266_v13, %v2004_v32  ;;  %v2081_v1 = vpop.f32.mrb[15].mxu1 }
 0x15a   :  { %v1757_v18 = vpop.eup %1756  ;;  %v1177_v30 = vadd.f32 1.0, %v1755_v23  ;;  %1776 = vpow2.f32 %v1554_v14  ;;  %v1299_v33 = vmul.f32 %v1267_v19, %v2007_v34 }
 0x15b   :  { %v1759_v35 = vpop.eup %1758  ;;  %v1178_v37 = vadd.f32 1.0, %v1757_v18  ;;  %v1587_v38 = vpack.c.bf16 %v1298_v27, %v1297_v16  ;;  %v1300_v20 = vmul.f32 %v1268_v25, %v2009_v36  ;;  %v2059_v39 = vpop.f32.mrb[16].mxu0 }
 0x15c   :  { %v1761_v29 = vpop.eup %1760  ;;  %1778 = vrcp.f32 %v1177_v30  ;;  %v1179_v40 = vadd.f32 1.0, %v1759_v35  ;;  %v1555_v22 = vmul.f32 -1.442695, %v2059_v39  ;;  %v2062_v41 = vpop.f32.mrb[17].mxu0 }
 0x15d   :  { %v1763_v32 = vpop.eup %1762  ;;  %1780 = vrcp.f32 %v1178_v37  ;;  %v1180_v42 = vadd.f32 1.0, %v1761_v29  ;;  %1425 = vst [vmem:[#allocation8] sm:$0xff] %v1587_v38  ;;  %v1588_v44 = vpack.c.bf16 %v1300_v20, %v1299_v33  ;;  %v1556_v34 = vmul.f32 -1.442695, %v2062_v41  ;;  %v2065_v45 = vpop.f32.mrb[18].mxu0 }
 0x15e   :  { %v1765_v36 = vpop.eup %1764  ;;  %v1269_v50 = vmul.f32 %v1763_v32, %v1991_v24  ;;  %1782 = vrcp.f32 %v1179_v40  ;;  %v1557_v53 = vmul.f32 -1.442695, %v2065_v45  ;;  %v2071_v55 = vpop.f32.mrb[19].mxu0 }
 0x15f   :  { %v1767_v58 = vpop.eup %1766  ;;  %v1270_v59 = vmul.f32 %v1765_v36, %v1994_v26  ;;  %1784 = vrcp.f32 %v1180_v42  ;;  %1426 = vst [vmem:[#allocation8 + $0x8] sm:$0xff] %v1588_v44  ;;  %v1558_v60 = vmul.f32 -1.442695, %v2071_v55  ;;  %v2095_v27 = vpop.f32.mrb[16].mxu1 }
 0x160   :  { %v1769_v62 = vpop.eup %1768  ;;  %v1271_v0 = vmul.f32 %v1767_v58, %v1997_v28  ;;  %1786 = vpow2.f32 %v1555_v22  ;;  %v1301_v24 = vmul.f32 %v1269_v50, %v2019_v49  ;;  %v2100_v33 = vpop.f32.mrb[17].mxu1 }
 0x161   :  { %v1771_v3 = vpop.eup %1770  ;;  %v1272_v4 = vmul.f32 %v1769_v62, %v2002_v31  ;;  %1788 = vpow2.f32 %v1556_v34  ;;  %v1302_v26 = vmul.f32 %v1270_v59, %v2024_v52  ;;  %v2104_v20 = vpop.f32.mrb[18].mxu1 }
 0x162   :  { %v1773_v7 = vpop.eup %1772  ;;  %v1181_v8 = vadd.f32 1.0, %v1771_v3  ;;  %1790 = vpow2.f32 %v1557_v53  ;;  %v1303_v9 = vmul.f32 %v1271_v0, %v2027_v54  ;;  %v2107_v22 = vpop.f32.mrb[19].mxu1 }
 0x163   :  { %v1775_v12 = vpop.eup %1774  ;;  %v1182_v13 = vadd.f32 1.0, %v1773_v7  ;;  %v1589_v14 = vpack.c.bf16 %v1302_v26, %v1301_v24  ;;  %1792 = vpow2.f32 %v1558_v60  ;;  %v1304_v28 = vmul.f32 %v1272_v4, %v2029_v56  ;;  %v2087_v49 = vpop.f32.mrb[20].mxu0 }
 0x164   :  { %v1777_v17 = vpop.eup %1776  ;;  %1794 = vrcp.f32 %v1181_v8  ;;  %v1183_v19 = vadd.f32 1.0, %v1775_v12  ;;  %v1559_v31 = vmul.f32 -1.442695, %v2087_v49  ;;  %v2090_v16 = vpop.f32.mrb[21].mxu0 }
 0x165   :  { %1796 = vrcp.f32 %v1182_v13  ;;  %v1184_v52 = vadd.f32 1.0, %v1777_v17  ;;  %1427 = vst [vmem:[#allocation8 + $0x10] sm:$0xff] %v1589_v14  ;;  %v1590_v23 = vpack.c.bf16 %v1304_v28, %v1303_v9  ;;  %v1560_v54 = vmul.f32 -1.442695, %v2090_v16  ;;  %v2093_v25 = vpop.f32.mrb[22].mxu0  ;;  %v2122_v3 = vpop.f32.mrb[20].mxu1 }
 0x166   :  { %v1779_v56 = vpop.eup %1778  ;;  %1798 = vrcp.f32 %v1183_v19  ;;  %v1561_v18 = vmul.f32 -1.442695, %v2093_v25  ;;  %v2098_v30 = vpop.f32.mrb[23].mxu0 }
 0x167   :  { %v1781_v35 = vpop.eup %1780  ;;  %v1273_v37 = vmul.f32 %v1779_v56, %v2011_v43  ;;  %1800 = vrcp.f32 %v1184_v52  ;;  %1428 = vst [vmem:[#allocation8 + $0x18] sm:$0xff] %v1590_v23  ;;  %v1562_v38 = vmul.f32 -1.442695, %v2098_v30 }
 0x168   :  { %v1783_v29 = vpop.eup %1782  ;;  %v1274_v40 = vmul.f32 %v1781_v35, %v2014_v46  ;;  %1802 = vpow2.f32 %v1559_v31 }
 0x169   :  { %v1785_v32 = vpop.eup %1784  ;;  %v1275_v42 = vmul.f32 %v1783_v29, %v2017_v48  ;;  %1804 = vpow2.f32 %v1560_v54  ;;  %v1305_v44 = vmul.f32 %v1273_v37, %v2039_v6 }
 0x16a   :  { %v1787_v34 = vpop.eup %1786  ;;  %v1276_v43 = vmul.f32 %v1785_v32, %v2022_v51  ;;  %1806 = vpow2.f32 %v1561_v18  ;;  %v1306_v36 = vmul.f32 %v1274_v40, %v2045_v11 }
 0x16b   :  { %v1789_v50 = vpop.eup %1788  ;;  %v1185_v53 = vadd.f32 1.0, %v1787_v34  ;;  %1808 = vpow2.f32 %v1562_v38  ;;  %v1307_v46 = vmul.f32 %v1275_v42, %v2049_v15  ;;  %v2114_v58 = vpop.f32.mrb[24].mxu0 }
 0x16c   :  { %v1791_v59 = vpop.eup %1790  ;;  %v1186_v60 = vadd.f32 1.0, %v1789_v50  ;;  %v1591_v62 = vpack.c.bf16 %v1306_v36, %v1305_v44  ;;  %v1308_v48 = vmul.f32 %v1276_v43, %v2053_v21  ;;  %v2117_v0 = vpop.f32.mrb[25].mxu0  ;;  %v1563_v24 = vmul.f32 -1.442695, %v2114_v58 }
 0x16d   :  { %v1793_v6 = vpop.eup %1792  ;;  %1810 = vrcp.f32 %v1185_v53  ;;  %v1187_v51 = vadd.f32 1.0, %v1791_v59  ;;  %v2120_v11 = vpop.f32.mrb[26].mxu0  ;;  %v1564_v7 = vmul.f32 -1.442695, %v2117_v0 }
 0x16e   :  { %v1795_v4 = vpop.eup %1794  ;;  %1812 = vrcp.f32 %v1186_v60  ;;  %v1188_v15 = vadd.f32 1.0, %v1793_v6  ;;  %1429 = vst [vmem:[#allocation8 + $0x20] sm:$0xff] %v1591_v62  ;;  %v1592_v26 = vpack.c.bf16 %v1308_v48, %v1307_v46  ;;  %v2125_v8 = vpop.f32.mrb[27].mxu0  ;;  %v1565_v13 = vmul.f32 -1.442695, %v2120_v11 }
 0x16f   :  { %v2127_v21 = vpop.f32.mrb[21].mxu1  ;;  %v1797_v9 = vpop.eup %1796  ;;  %v1277_v12 = vmul.f32 %v1795_v4, %v2031_v63  ;;  %1814 = vrcp.f32 %v1187_v51  ;;  %v1566_v19 = vmul.f32 -1.442695, %v2125_v8 }
 0x170   :  { %v2131_v14 = vpop.f32.mrb[22].mxu1  ;;  %v1799_v28 = vpop.eup %1798  ;;  %v1278_v17 = vmul.f32 %v1797_v9, %v2034_v2  ;;  %1816 = vrcp.f32 %v1188_v15  ;;  %1430 = vst [vmem:[#allocation8 + $0x28] sm:$0xff] %v1592_v26 }
 0x171   :  { %v2135_v31 = vpop.f32.mrb[23].mxu1  ;;  %v1801_v52 = vpop.eup %1800  ;;  %v1279_v23 = vmul.f32 %v1799_v28, %v2037_v5  ;;  %1818 = vpow2.f32 %v1563_v24  ;;  %v1309_v63 = vmul.f32 %v1277_v12, %v2067_v47 }
 0x172   :  { %v1803_v54 = vpop.eup %1802  ;;  %v1280_v56 = vmul.f32 %v1801_v52, %v2043_v10  ;;  %1820 = vpow2.f32 %v1564_v7  ;;  %v1310_v18 = vmul.f32 %v1278_v17, %v2073_v57  ;;  %v2153_v50 = vpop.f32.mrb[24].mxu1 }
 0x173   :  { %v1805_v35 = vpop.eup %1804  ;;  %v1189_v2 = vadd.f32 1.0, %v1803_v54  ;;  %1822 = vpow2.f32 %v1565_v13  ;;  %v1311_v37 = vmul.f32 %v1279_v23, %v2077_v61  ;;  %v2142_v38 = vpop.f32.mrb[28].mxu0 }
 0x174   :  { %v1807_v29 = vpop.eup %1806  ;;  %v1190_v40 = vadd.f32 1.0, %v1805_v35  ;;  %v1593_v32 = vpack.c.bf16 %v1310_v18, %v1309_v63  ;;  %1824 = vpow2.f32 %v1566_v19  ;;  %v1312_v5 = vmul.f32 %v1280_v56, %v2081_v1  ;;  %v2145_v47 = vpop.f32.mrb[29].mxu0 }
 0x175   :  { %v1809_v42 = vpop.eup %1808  ;;  %1826 = vrcp.f32 %v1189_v2  ;;  %v1191_v10 = vadd.f32 1.0, %v1807_v29  ;;  %v1567_v57 = vmul.f32 -1.442695, %v2142_v38  ;;  %v2148_v44 = vpop.f32.mrb[30].mxu0  ;;  %v1568_v43 = vmul.f32 -1.442695, %v2145_v47 }
 0x176   :  { %1828 = vrcp.f32 %v1190_v40  ;;  %v1192_v34 = vadd.f32 1.0, %v1809_v42  ;;  %1431 = vst [vmem:[#allocation8 + $0x30] sm:$0xff] %v1593_v32  ;;  %v1594_v61 = vpack.c.bf16 %v1312_v5, %v1311_v37  ;;  %v2151_v36 = vpop.f32.mrb[31].mxu0  ;;  %v1569_v53 = vmul.f32 -1.442695, %v2148_v44  ;;  %v2156_v46 = vpop.f32.mrb[25].mxu1 }
 0x177   :  { %v1811_v1 = vpop.eup %1810  ;;  %1830 = vrcp.f32 %v1191_v10  ;;  %v1570_v62 = vmul.f32 -1.442695, %v2151_v36  ;;  %v2160_v48 = vpop.f32.mrb[26].mxu1 }
 0x178   :  { %v1813_v59 = vpop.eup %1812  ;;  %v1281_v60 = vmul.f32 %v1811_v1, %v2059_v39  ;;  %1832 = vrcp.f32 %v1192_v34  ;;  %1432 = vst [vmem:[#allocation8 + $0x38] sm:$0xff] %v1594_v61  ;;  %v2163_v24 = vpop.f32.mrb[27].mxu1 }
 0x179   :  { %v1815_v6 = vpop.eup %1814  ;;  %v1282_v51 = vmul.f32 %v1813_v59, %v2062_v41  ;;  %1834 = vpow2.f32 %v1567_v57 }
 0x17a   :  { %v1817_v4 = vpop.eup %1816  ;;  %v1283_v15 = vmul.f32 %v1815_v6, %v2065_v45  ;;  %1836 = vpow2.f32 %v1568_v43  ;;  %v1313_v26 = vmul.f32 %v1281_v60, %v2095_v27  ;;  %v2171_v45 = vpop.f32.mrb[28].mxu1 }
 0x17b   :  { %v1819_v7 = vpop.eup %1818  ;;  %v1284_v39 = vmul.f32 %v1817_v4, %v2071_v55  ;;  %1838 = vpow2.f32 %v1569_v53  ;;  %v1314_v9 = vmul.f32 %v1282_v51, %v2100_v33  ;;  %v2173_v63 = vpop.f32.mrb[29].mxu1 }
 0x17c   :  { %v1821_v12 = vpop.eup %1820  ;;  %v1193_v13 = vadd.f32 1.0, %v1819_v7  ;;  %1840 = vpow2.f32 %v1570_v62  ;;  %v1315_v41 = vmul.f32 %v1283_v15, %v2104_v20  ;;  %v873_v56 = vpop.f32.mrb[30].mxu1 }
 0x17d   :  { %v1823_v28 = vpop.eup %1822  ;;  %v1194_v17 = vadd.f32 1.0, %v1821_v12  ;;  %v1595_v19 = vpack.c.bf16 %v1314_v9, %v1313_v26  ;;  %v1316_v52 = vmul.f32 %v1284_v39, %v2107_v22  ;;  %v875_v35 = vpop.f32.mrb[31].mxu1 }
 0x17e   :  { %v1825_v23 = vpop.eup %1824  ;;  %1842 = vrcp.f32 %v1193_v13  ;;  %v1195_v27 = vadd.f32 1.0, %v1823_v28 }
 0x17f   :  { %v1827_v55 = vpop.eup %1826  ;;  %1844 = vrcp.f32 %v1194_v17  ;;  %v1196_v33 = vadd.f32 1.0, %v1825_v23  ;;  %1433 = vst [vmem:[#allocation8 + $0x40] sm:$0xff] %v1595_v19  ;;  %v1596_v54 = vpack.c.bf16 %v1316_v52, %v1315_v41 }
 0x180   :  { %v1829_v18 = vpop.eup %1828  ;;  %v1285_v20 = vmul.f32 %v1827_v55, %v2087_v49  ;;  %1846 = vrcp.f32 %v1195_v27 }
 0x181   :  { %v1831_v2 = vpop.eup %1830  ;;  %v1286_v22 = vmul.f32 %v1829_v18, %v2090_v16  ;;  %1848 = vrcp.f32 %v1196_v33  ;;  %1434 = vst [vmem:[#allocation8 + $0x48] sm:$0xff] %v1596_v54 }
 0x182   :  { %v1833_v37 = vpop.eup %1832  ;;  %v1287_v29 = vmul.f32 %v1831_v2, %v2093_v25  ;;  %v1317_v40 = vmul.f32 %v1285_v20, %v2122_v3 }
 0x183   :  { %v1835_v32 = vpop.eup %1834  ;;  %v1288_v5 = vmul.f32 %v1833_v37, %v2098_v30  ;;  %v1318_v42 = vmul.f32 %v1286_v22, %v2127_v21 }
 0x184   :  { %v1837_v10 = vpop.eup %1836  ;;  %v1197_v57 = vadd.f32 1.0, %v1835_v32  ;;  %v1319_v49 = vmul.f32 %v1287_v29, %v2131_v14 }
 0x185   :  { %v1839_v34 = vpop.eup %1838  ;;  %v1198_v61 = vadd.f32 1.0, %v1837_v10  ;;  %v1597_v43 = vpack.c.bf16 %v1318_v42, %v1317_v40  ;;  %v1320_v16 = vmul.f32 %v1288_v5, %v2135_v31 }
 0x186   :  { %v1841_v1 = vpop.eup %1840  ;;  %1850 = vrcp.f32 %v1197_v57  ;;  %v1199_v53 = vadd.f32 1.0, %v1839_v34 }
 0x187   :  { %1852 = vrcp.f32 %v1198_v61  ;;  %v1200_v25 = vadd.f32 1.0, %v1841_v1  ;;  %1435 = vst [vmem:[#allocation8 + $0x50] sm:$0xff] %v1597_v43  ;;  %v1598_v3 = vpack.c.bf16 %v1320_v16, %v1319_v49 }
 0x188   :  { %v1843_v59 = vpop.eup %1842  ;;  %1854 = vrcp.f32 %v1199_v53 }
 0x189   :  { %v1845_v30 = vpop.eup %1844  ;;  %v1289_v21 = vmul.f32 %v1843_v59, %v2114_v58  ;;  %1856 = vrcp.f32 %v1200_v25  ;;  %1436 = vst [vmem:[#allocation8 + $0x58] sm:$0xff] %v1598_v3 }
 0x18a   :  { %v1847_v14 = vpop.eup %1846  ;;  %v1290_v60 = vmul.f32 %v1845_v30, %v2117_v0 }
 0x18b   :  { %v1849_v62 = vpop.eup %1848  ;;  %v1291_v31 = vmul.f32 %v1847_v14, %v2120_v11  ;;  %v1321_v6 = vmul.f32 %v1289_v21, %v2153_v50 }
 0x18c   :  { %v1292_v51 = vmul.f32 %v1849_v62, %v2125_v8  ;;  %v1322_v4 = vmul.f32 %v1290_v60, %v2156_v46 }
 0x18d   :  { %v1323_v15 = vmul.f32 %v1291_v31, %v2160_v48 }
 0x18e   :  { %v1599_v26 = vpack.c.bf16 %v1322_v4, %v1321_v6  ;;  %v1324_v7 = vmul.f32 %v1292_v51, %v2163_v24 }
 0x190   :  { %v1851_v58 = vpop.eup %1850  ;;  %1437 = vst [vmem:[#allocation8 + $0x60] sm:$0xff] %v1599_v26  ;;  %v1600_v39 = vpack.c.bf16 %v1324_v7, %v1323_v15 }
 0x191   :  { %v1853_v9 = vpop.eup %1852  ;;  %v1293_v0 = vmul.f32 %v1851_v58, %v2142_v38 }
 0x192   :  { %v1855_v12 = vpop.eup %1854  ;;  %v1294_v11 = vmul.f32 %v1853_v9, %v2145_v47  ;;  %1438 = vst [vmem:[#allocation8 + $0x68] sm:$0xff] %v1600_v39 }
 0x193   :  { %v1857_v50 = vpop.eup %1856  ;;  %v1295_v8 = vmul.f32 %v1855_v12, %v2148_v44  ;;  %v1325_v46 = vmul.f32 %v1293_v0, %v2171_v45 }
 0x194   :  { %v1296_v48 = vmul.f32 %v1857_v50, %v2151_v36  ;;  %v1326_v13 = vmul.f32 %v1294_v11, %v2173_v63 }
 0x195   :  { %v1327_v24 = vmul.f32 %v1295_v8, %v873_v56 }
 0x196   :  { %v1601_v41 = vpack.c.bf16 %v1326_v13, %v1325_v46  ;;  %v1328_v28 = vmul.f32 %v1296_v48, %v875_v35 }
 0x198   :  { %1439 = vst [vmem:[#allocation8 + $0x70] sm:$0xff] %v1601_v41  ;;  %v1602_v38 = vpack.c.bf16 %v1328_v28, %v1327_v24 }
 0x19a   :  { %1440 = vst [vmem:[#allocation8 + $0x78] sm:$0xff] %v1602_v38 }
 0x19b   :  { %1913 = shalt.err (!%p1910_p6)
}
 0x19c   :  { %s1914_s12 = scalar_lea.hbm %s2214_s2, 2048 }
 0x19d   :  { %p1915_p7 = scmp.ne.s32.totalorder %s2214_s2, %s1914_s12  ;;  %p1918_p8 = scmp.lt.u32.totalorder %s1914_s12, %s2214_s2 }
 0x19f   :  { %p1920_p9 = pnand %p1918_p8, %p1915_p7 }
 0x1a1   :  { %1923 = shalt.err (!%p1920_p9)
}
 0x1a2   :  { %1452 = dma.vmem_to_hbm [thread:$0]  %s1447_s8, 2048, %s2214_s2, [#allocation5], %s1931_s19, %s1931_s19, %s1932_s20  }
 0x1a3   :  { %1928 = dma.done.wait [#allocation5], 2048  }
 0x1a4   :  { %1929 = vsyncadd [#allocation5], 4294965248 }
 0x1a5   :  { %1456 = vsyncpa [#allocation4], 1 }
 0x1a6   :  { %1457 = vsyncpa [#allocation7], 1 }
 0x1a7   :  { %1458 = vsyncpa [#allocation5], 1 }

</bundles_post_ra>
